<compile_context>
chip_gen: v7x
topology: tpu7x:2x2x1
jax: 0.10.0
libtpu: 0.0.40
codegen_flags: <defaults>
</compile_context>

<pallas_src>
import functools

import jax
import jax.numpy as jnp
from jax import lax
from jax.experimental import pallas as pl
from jax.experimental.pallas import tpu as pltpu

LANES = 128
SUBLANES = 8
MAX_ROW_TILE = 4096                    # 2 MiB f32 per input block
VMEM_LIMIT_BYTES = 32 * 1024 * 1024    # headroom for big tiles on v5e


def _core_splits():
    """(num_splits, use_core_parallel): 2-way split only on multi-TC chips (v7x)."""
    try:
        kind = jax.devices()[0].device_kind.lower()
    except Exception:
        return 1, False
    if "v7" in kind:          # v7x: 2 TensorCores per chip
        return 2, True
    return 1, False           # v5e / v6e: single TensorCore


def _mape_kernel(o_ref, l_ref, out_ref, acc_ref, *,
                 row_tile, total_rows, nblocks, blocks_per_split,
                 ragged_last, has_phantom):
    c = pl.program_id(0)      # per-core split (size 1 on single-TC chips)
    i = pl.program_id(1)      # sequential reduction axis
    blk = c * blocks_per_split + i

    @pl.when(i == 0)
    def _():
        acc_ref[...] = jnp.zeros_like(acc_ref)

    def accumulate(masked):
        o = o_ref[...].astype(jnp.float32)
        l = l_ref[...].astype(jnp.float32)
        err = jnp.abs((o - l) / l)
        if masked:
            # Mask rows past the true extent (ragged overhang only).
            row_idx = blk * row_tile + lax.broadcasted_iota(
                jnp.int32, (row_tile, LANES), 0)
            err = jnp.where(row_idx < total_rows, err, 0.0)
        # Vreg-shaped accumulator: fold the tile's 8-row groups together.
        # Pure VPU adds; no cross-lane traffic in the hot loop.
        acc_ref[...] += err.reshape(
            row_tile // SUBLANES, SUBLANES, LANES).sum(axis=0)

    if ragged_last:
        # Full interior blocks: no mask work.
        @pl.when(blk < nblocks - 1)
        def _():
            accumulate(masked=False)

        # Single ragged last block: only place the iota+cmp+select is paid.
        @pl.when(blk == nblocks - 1)
        def _():
            accumulate(masked=True)
    elif has_phantom:
        @pl.when(blk < nblocks)
        def _():
            accumulate(masked=False)
    else:
        accumulate(masked=False)

    @pl.when(i == pl.num_programs(1) - 1)
    def _():
        out_ref[...] = acc_ref[...].reshape(1, SUBLANES, LANES)


def mape(outs, labels):
    """mean(abs((outs - labels) / labels)); labels == 0 -> inf/nan (PyTorch semantics)."""
    assert outs.shape == labels.shape
    total_n = outs.size

    o_flat = outs.reshape(-1)
    l_flat = labels.reshape(-1)

    # Lane-dense slab.  total_n % 128 == 0 -> free reshape, zero copies.
    lane_rem = (-total_n) % LANES
    if lane_rem:
        # TODO(synk): this concatenate still copies both inputs for
        # lane-misaligned sizes; a fully zero-copy ragged path needs manual
        # 1-D DMA.  Pad values are o == l == 1 so they contribute exactly 0.
        o_flat = jnp.concatenate([o_flat, jnp.ones((lane_rem,), o_flat.dtype)])
        l_flat = jnp.concatenate([l_flat, jnp.ones((lane_rem,), l_flat.dtype)])

    rows = o_flat.size // LANES
    o2 = o_flat.reshape(rows, LANES)
    l2 = l_flat.reshape(rows, LANES)

    num_splits, core_parallel = _core_splits()

    # Sublane alignment: 8 for 32-bit, 16 for bf16, 32 for 8-bit dtypes.
    itemsize = min(int(o2.dtype.itemsize), int(l2.dtype.itemsize))
    align = max(SUBLANES, 32 // max(itemsize, 1))

    target = pl.cdiv(rows, num_splits)
    row_tile = min(MAX_ROW_TILE, ((target + align - 1) // align) * align)
    nblocks = pl.cdiv(rows, row_tile)
    blocks_per_split = pl.cdiv(nblocks, num_splits)
    grid = (num_splits, blocks_per_split)

    ragged_last = (nblocks * row_tile != rows)                 # last block overhangs
    has_phantom = (num_splits * blocks_per_split != nblocks)   # trailing no-op blocks

    def in_map(c, i):
        # Clamp phantom trailing blocks; they are skipped in-kernel.
        return (jnp.minimum(c * blocks_per_split + i, nblocks - 1), 0)

    kernel = functools.partial(
        _mape_kernel,
        row_tile=row_tile,
        total_rows=rows,
        nblocks=nblocks,
        blocks_per_split=blocks_per_split,
        ragged_last=ragged_last,
        has_phantom=has_phantom,
    )

    dim0 = (pltpu.CORE_PARALLEL if (core_parallel and num_splits > 1)
            else pltpu.PARALLEL)

    partials = pl.pallas_call(
        kernel,
        out_shape=jax.ShapeDtypeStruct((num_splits, SUBLANES, LANES),
                                       jnp.float32),
        grid_spec=pltpu.PrefetchScalarGridSpec(
            num_scalar_prefetch=0,
            grid=grid,
            in_specs=[
                pl.BlockSpec((row_tile, LANES), in_map),
                pl.BlockSpec((row_tile, LANES), in_map),
            ],
            out_specs=pl.BlockSpec((1, SUBLANES, LANES),
                                   lambda c, i: (c, 0, 0)),
            scratch_shapes=[pltpu.VMEM((SUBLANES, LANES), jnp.float32)],
        ),
        compiler_params=pltpu.CompilerParams(
            dimension_semantics=(dim0, pltpu.ARBITRARY),
            vmem_limit_bytes=VMEM_LIMIT_BYTES,
        ),
    )(o2, l2)

    # Tiny final cross-lane reduce + normalize outside the kernel.
    return jnp.sum(partials) / jnp.float32(total_n)


def mape_ref(outs, labels):
    return jnp.mean(jnp.abs((outs - labels) / labels))


if __name__ == "__main__":
    key = jax.random.PRNGKey(0)
    k1, k2, k3, k4 = jax.random.split(key, 4)

    # Primary case: NCHW-style small example (lane-aligned: 2*4*16*16 = 2048).
    shape = (2, 4, 16, 16)
    outs = jax.random.normal(k1, shape, dtype=jnp.float32)
    labels = jax.random.uniform(k2, shape, dtype=jnp.float32,
                                minval=0.5, maxval=1.5)  # keep labels away from 0
    loss = mape(outs, labels)
    jax.block_until_ready(loss)
    ref = mape_ref(outs, labels)
    assert jnp.allclose(loss, ref, rtol=1e-5, atol=1e-6), (loss, ref)

    # Secondary case: lane-misaligned size exercising the ragged / masked path.
    shape2 = (3, 5, 16)  # 240 elements
    outs2 = jax.random.normal(k3, shape2, dtype=jnp.float32)
    labels2 = jax.random.uniform(k4, shape2, dtype=jnp.float32,
                                 minval=0.5, maxval=1.5)
    loss2 = mape(outs2, labels2)
    jax.block_until_ready(loss2)
    ref2 = mape_ref(outs2, labels2)
    assert jnp.allclose(loss2, ref2, rtol=1e-5, atol=1e-6), (loss2, ref2)

    print("KERNEL_OK")
</pallas_src>

<mosaic_0001>
module attributes {stable_mosaic.version = 11 : i64} {
  func.func @_mape_kernel(%arg0: i32, %arg1: i32, %arg2: memref<16x128xf32, #tpu.memory_space<vmem>>, %arg3: memref<16x128xf32, #tpu.memory_space<vmem>>, %arg4: memref<1x8x128xf32, #tpu.memory_space<vmem>>, %arg5: memref<8x128xf32, #tpu.memory_space<vmem>>) attributes {dimension_semantics = [#tpu.dimension_semantics<parallel>, #tpu.dimension_semantics<arbitrary>], iteration_bounds = array<i64: 1, 1>, scalar_prefetch = 0 : i64, scratch_operands = 1 : i64, tpu.core_type = #tpu.core_type<tc>, window_params = [{transform_indices = @transform_0, window_bounds = array<i64: 16, 128>}, {transform_indices = @transform_1, window_bounds = array<i64: 16, 128>}, {transform_indices = @transform_2, window_bounds = array<i64: 1, 8, 128>}]} {
    %c0_i32 = arith.constant 0 : i32
    %0 = arith.cmpi eq, %arg1, %c0_i32 : i32
    %1 = arith.extui %0 : i1 to i32
    %c0_i32_0 = arith.constant 0 : i32
    %2 = arith.cmpi ne, %1, %c0_i32_0 : i32
    scf.if %2 {
      %cst_10 = arith.constant 0.000000e+00 : f32
      %16 = vector.broadcast %cst_10 : f32 to vector<8x128xf32>
      %c0_11 = arith.constant 0 : index
      %c0_12 = arith.constant 0 : index
      %17 = vector.load %arg5[%c0_11, %c0_12] : memref<8x128xf32, #tpu.memory_space<vmem>>, vector<8x128xf32>
      tpu.vector_store %arg5[%c0_11, %c0_12], %16 {strides = array<i32>} : memref<8x128xf32, #tpu.memory_space<vmem>>, vector<8x128xf32>,
    } else {
    }
    %c0 = arith.constant 0 : index
    %c0_1 = arith.constant 0 : index
    %3 = vector.load %arg2[%c0, %c0_1] : memref<16x128xf32, #tpu.memory_space<vmem>>, vector<16x128xf32>
    %c0_2 = arith.constant 0 : index
    %c0_3 = arith.constant 0 : index
    %4 = vector.load %arg3[%c0_2, %c0_3] : memref<16x128xf32, #tpu.memory_space<vmem>>, vector<16x128xf32>
    %5 = arith.subf %3, %4 : vector<16x128xf32>
    %6 = arith.divf %5, %4 : vector<16x128xf32>
    %7 = math.absf %6 : vector<16x128xf32>
    %c0_4 = arith.constant 0 : index
    %c0_5 = arith.constant 0 : index
    %8 = vector.load %arg5[%c0_4, %c0_5] : memref<8x128xf32, #tpu.memory_space<vmem>>, vector<8x128xf32>
    %9 = vector.shape_cast %7 : vector<16x128xf32> to vector<2x8x128xf32>
    %cst = arith.constant dense<0.000000e+00> : vector<8x128xf32>
    %10 = vector.multi_reduction <add>, %9, %cst [0] : vector<2x8x128xf32> to vector<8x128xf32>
    %11 = arith.addf %8, %10 : vector<8x128xf32>
    %c0_6 = arith.constant 0 : index
    %c0_7 = arith.constant 0 : index
    %12 = vector.load %arg5[%c0_6, %c0_7] : memref<8x128xf32, #tpu.memory_space<vmem>>, vector<8x128xf32>
    tpu.vector_store %arg5[%c0_6, %c0_7], %11 {strides = array<i32>} : memref<8x128xf32, #tpu.memory_space<vmem>>, vector<8x128xf32>,
    %c0_i32_8 = arith.constant 0 : i32
    %13 = arith.cmpi eq, %arg1, %c0_i32_8 : i32
    %14 = arith.extui %13 : i1 to i32
    %c0_i32_9 = arith.constant 0 : i32
    %15 = arith.cmpi ne, %14, %c0_i32_9 : i32
    scf.if %15 {
      %c0_10 = arith.constant 0 : index
      %c0_11 = arith.constant 0 : index
      %16 = vector.load %arg5[%c0_10, %c0_11] : memref<8x128xf32, #tpu.memory_space<vmem>>, vector<8x128xf32>
      %17 = vector.shape_cast %16 : vector<8x128xf32> to vector<1x8x128xf32>
      %c0_12 = arith.constant 0 : index
      %c0_13 = arith.constant 0 : index
      %c0_14 = arith.constant 0 : index
      %18 = vector.load %arg4[%c0_12, %c0_13, %c0_14] : memref<1x8x128xf32, #tpu.memory_space<vmem>>, vector<1x8x128xf32>
      tpu.vector_store %arg4[%c0_12, %c0_13, %c0_14], %17 {strides = array<i32>} : memref<1x8x128xf32, #tpu.memory_space<vmem>>, vector<1x8x128xf32>,
    } else {
    }
    return
  }
  func.func @transform_0(%arg0: i32, %arg1: i32) -> (i32, i32) {
    %c1_i32 = arith.constant 1 : i32
    %0 = arith.muli %arg0, %c1_i32 : i32
    %1 = arith.addi %0, %arg1 : i32
    %c0_i32 = arith.constant 0 : i32
    %2 = arith.minsi %1, %c0_i32 : i32
    %c0_i32_0 = arith.constant 0 : i32
    %c0_i32_1 = arith.constant 0 : i32
    return %2, %c0_i32_0 : i32, i32
  }
  func.func @transform_1(%arg0: i32, %arg1: i32) -> (i32, i32) {
    %c1_i32 = arith.constant 1 : i32
    %0 = arith.muli %arg0, %c1_i32 : i32
    %1 = arith.addi %0, %arg1 : i32
    %c0_i32 = arith.constant 0 : i32
    %2 = arith.minsi %1, %c0_i32 : i32
    %c0_i32_0 = arith.constant 0 : i32
    %c0_i32_1 = arith.constant 0 : i32
    return %2, %c0_i32_0 : i32, i32
  }
  func.func @transform_2(%arg0: i32, %arg1: i32) -> (i32, i32, i32) {
    %c0_i32 = arith.constant 0 : i32
    %c0_i32_0 = arith.constant 0 : i32
    %c0_i32_1 = arith.constant 0 : i32
    return %arg0, %c0_i32, %c0_i32_0 : i32, i32, i32
  }
}

</mosaic_0001>

<bundles_post_ra>
// kernel: tpu_custom_call.1
= control target key start
LH: loop header
LB: loop body
LE: loop exit
PB: predicated region body
PF: predicated region fallthrough
CT: control target
= control target key end

     0   :  { %7 = vsyncpa [#allocation4], 0  ;;  %s243_s0 = inlined_call_operand.hbm [shape: f32[16,128], index: 0, kind: input, shape index: {}]   ;;  %s244_s1 = inlined_call_operand.hbm [shape: f32[16,128], index: 1, kind: input, shape index: {}]   ;;  %s245_s2 = inlined_call_operand.hbm [shape: f32[1,8,128], index: 2, kind: output, shape index: {}]  }
   0x1   :  { %8 = vsyncpa [#allocation7], 0 }
   0x2   :  { %9 = vsyncpa [#allocation5], 0  ;;  %s187_s9 = smov [#allocation3]   ;;  %s115_s13 = scalar_lea.hbm %s243_s0, 256 }
   0x3   :  { %s21_s10 = sshll.u32 %s187_s9, 4  ;;  %p116_p0 = scmp.ne.s32.totalorder %s243_s0, %s115_s13  ;;  %s22_s10 = int_to_ptr.vmem [resolvable:$true] %s21_s10 }
   0x4   :  { %p119_p1 = scmp.lt.u32.totalorder %s115_s13, %s243_s0 }
   0x6   :  { %p121_p2 = pnand %p119_p1, %p116_p0 }
   0x8   :  { %124 = shalt.err (!%p121_p2)
}
   0x9   :  { %s125_s18 = scalar_lea.vmem %s22_s10, 256  ;;  %p130_p4 = scmp.lt.s32.totalorder %s22_s10, %s22_s10 }
   0xa   :  { %p126_p3 = scmp.ne.s32.totalorder %s22_s10, %s125_s18  ;;  %p131_p5 = scmp.lt.s32.totalorder %s125_s18, %s125_s18 }
   0xc   :  { %p132_p6 = por %p131_p5, %p130_p4 }
   0xe   :  { %p133_p7 = pnand %p132_p6, %p126_p3 }
  0x10   :  { %136 = shalt.err (!%p133_p7)
}
  0x11   :  { %s188_s19 = smov 128   ;;  %s189_s20 = smov 8  }
  0x12   :  { %27 = dma.hbm_to_vmem [thread:$0]  %s243_s0, 256, %s22_s10, [#allocation4], %s188_s19, %s188_s19, %s189_s20  }
  0x13   :  { %s190_s23 = smov [#allocation6]   ;;  %s137_s27 = scalar_lea.hbm %s244_s1, 256 }
  0x14   :  { %s39_s24 = sshll.u32 %s190_s23, 4  ;;  %p138_p8 = scmp.ne.s32.totalorder %s244_s1, %s137_s27  ;;  %s40_s24 = int_to_ptr.vmem [resolvable:$true] %s39_s24 }
  0x15   :  { %p141_p9 = scmp.lt.u32.totalorder %s137_s27, %s244_s1 }
  0x17   :  { %p143_p10 = pnand %p141_p9, %p138_p8 }
  0x19   :  { %146 = shalt.err (!%p143_p10)
}
  0x1a   :  { %s147_s4 = scalar_lea.vmem %s40_s24, 256  ;;  %p152_p12 = scmp.lt.s32.totalorder %s40_s24, %s40_s24 }
  0x1b   :  { %p148_p11 = scmp.ne.s32.totalorder %s40_s24, %s147_s4  ;;  %p153_p13 = scmp.lt.s32.totalorder %s147_s4, %s147_s4 }
  0x1d   :  { %p154_p0 = por %p153_p13, %p152_p12 }
  0x1f   :  { %p155_p1 = pnand %p154_p0, %p148_p11 }
  0x21   :  { %158 = shalt.err (!%p155_p1)
}
  0x22   :  { %45 = dma.hbm_to_vmem [thread:$0]  %s244_s1, 256, %s40_s24, [#allocation7], %s188_s19, %s188_s19, %s189_s20  }
  0x23   :  { %181 = dma.done.wait [#allocation4], 256  }
  0x24   :  { %182 = vsyncadd [#allocation4], 4294967040 }
  0x25   :  { %183 = dma.done.wait [#allocation7], 256  }
  0x26   :  { %184 = vsyncadd [#allocation7], 4294967040  ;;  %v67_v0 = vld [vmem:[#allocation6] sm:$0xff]  ;;  %v68_v1 = vld [vmem:[#allocation6 + $0x8] sm:$0xff]  ;;  %s191_s6 = smov [#allocation8]  }
  0x27   :  { %111 = vrcp.f32 %v67_v0  ;;  %v65_v2 = vld [vmem:[#allocation3] sm:$0xff]  ;;  %v66_v3 = vld [vmem:[#allocation3 + $0x8] sm:$0xff]  ;;  %s92_s7 = sshll.u32 %s191_s6, 4  ;;  %s93_s7 = int_to_ptr.vmem [resolvable:$true] %s92_s7 }
  0x28   :  { %113 = vrcp.f32 %v68_v1  ;;  %v69_v4 = vsub.f32 %v65_v2, %v67_v0  ;;  %v70_v5 = vsub.f32 %v66_v3, %v68_v1  ;;  %s159_s1 = scalar_lea.vmem %s93_s7, 128  ;;  %p164_p3 = scmp.lt.s32.totalorder %s93_s7, %s93_s7 }
  0x29   :  { %p160_p2 = scmp.ne.s32.totalorder %s93_s7, %s159_s1  ;;  %p165_p4 = scmp.lt.s32.totalorder %s159_s1, %s159_s1 }
  0x2b   :  { %p166_p5 = por %p165_p4, %p164_p3 }
  0x2d   :  { %p167_p6 = pnand %p166_p5, %p160_p2 }
  0x31   :  { %v112_v6 = vpop.eup %111 }
  0x32   :  { %v114_v7 = vpop.eup %113  ;;  %v72_v8 = vmul.f32 %v112_v6, %v69_v4 }
  0x33   :  { %v74_v9 = vmul.f32 %v114_v7, %v70_v5 }
  0x34   :  { %v75_v10 = vand.u32 2147483647, %v72_v8 }
  0x35   :  { %v76_v11 = vand.u32 2147483647, %v74_v9 }
  0x37   :  { %v78_v12 = vadd.f32 %v76_v11, %v75_v10 }
  0x39   :  { %85 = vst [vmem:[#allocation8] sm:$0xff] %v78_v12 }
  0x3a   :  { %170 = shalt.err (!%p167_p6)
}
  0x3b   :  { %s171_s10 = scalar_lea.hbm %s245_s2, 128 }
  0x3c   :  { %p172_p7 = scmp.ne.s32.totalorder %s245_s2, %s171_s10  ;;  %p175_p8 = scmp.lt.u32.totalorder %s171_s10, %s245_s2 }
  0x3e   :  { %p177_p9 = pnand %p175_p8, %p172_p7 }
  0x40   :  { %180 = shalt.err (!%p177_p9)
}
  0x41   :  { %95 = dma.vmem_to_hbm [thread:$0]  %s93_s7, 128, %s245_s2, [#allocation5]  }
  0x42   :  { %185 = dma.done.wait [#allocation5], 128  }
  0x43   :  { %186 = vsyncadd [#allocation5], 4294967168 }
  0x44   :  { %99 = vsyncpa [#allocation4], 1 }
  0x45   :  { %100 = vsyncpa [#allocation7], 1 }
  0x46   :  { %101 = vsyncpa [#allocation5], 1 }

</bundles_post_ra>
